<compile_context>
chip_gen: v6e
topology: v6e:2x2x1
jax: 0.10.0
libtpu: 0.0.40
codegen_flags: <defaults>
</compile_context>

<pallas_src>
import jax
import jax.numpy as jnp
from jax.experimental import pallas as pl
from jax.experimental.pallas import tpu as pltpu


def _make_dma_copy_kernel(chunks):
    """Build a kernel doing a row-prefix HBM->HBM copy as len(chunks) overlapped DMAs.

    chunks: static list of (row_start, row_size) covering [0, n_rows).
    """

    def kernel(src_hbm, dst_hbm, sems):
        copies = []
        for c, (start, size) in enumerate(chunks):
            cp = pltpu.make_async_copy(
                src_hbm.at[pl.ds(start, size)],
                dst_hbm.at[pl.ds(start, size)],
                sems.at[c],
            )
            cp.start()
            copies.append(cp)
        # Wait for all outstanding DMAs before the kernel returns.
        for cp in copies:
            cp.wait()

    return kernel


def _plan_chunks(n_rows: int, row_bytes: int,
                 max_chunks: int = 4, min_chunk_bytes: int = 1 << 20):
    """Split the copied rows into 1..max_chunks DMA descriptors (>= ~1 MiB each)."""
    total_bytes = n_rows * row_bytes
    n_chunks = int(max(1, min(max_chunks, total_bytes // min_chunk_bytes, n_rows)))
    rows = -(-n_rows // n_chunks)                 # cdiv
    if rows >= 8:
        rows = -(-rows // 8) * 8                  # keep chunk starts sublane-aligned
    chunks = []
    start = 0
    while start < n_rows:
        size = min(rows, n_rows - start)
        chunks.append((start, size))
        start += size
    return chunks


def _dense_view(table: jnp.ndarray, n_rows: int):
    """Repack (rows, cols) to the widest lane width dividing both the full table
    and the copied prefix, so DMA rows are long and contiguous (metadata-only)."""
    total_rows, cols = table.shape
    total = total_rows * cols
    copy = n_rows * cols
    for w in (8192, 4096, 2048, 1024, 512, 256, 128):
        if total % w == 0 and copy % w == 0:
            return table.reshape(total // w, w), copy // w
    return table, n_rows


def _copy_rows_pallas(table: jnp.ndarray, n_rows: int) -> jnp.ndarray:
    """Copy table[:n_rows, :] with a single-invocation HBM->HBM DMA kernel."""
    _, cols = table.shape
    chunks = _plan_chunks(n_rows, cols * table.dtype.itemsize)
    kernel = _make_dma_copy_kernel(chunks)
    return pl.pallas_call(
        kernel,
        out_shape=jax.ShapeDtypeStruct((n_rows, cols), table.dtype),
        in_specs=[pl.BlockSpec(memory_space=pl.ANY)],
        out_specs=pl.BlockSpec(memory_space=pl.ANY),
        scratch_shapes=[pltpu.SemaphoreType.DMA((len(chunks),))],
    )(table)


def learned_positional_embedding2(pe: jnp.ndarray, x: jnp.ndarray, *,
                                  min_pallas_bytes: int = 4 << 20,
                                  force_pallas: bool = False) -> jnp.ndarray:
    """Forward of LearnedPositionalEmbedding2.

    pe: (1, max_len, d_model) learned table; x: (B, S, ...) — only S = x.shape[1]
    is consumed (static under jit).  Returns pe[:, :S, :], shape (1, S, d_model).
    """
    _, max_len, d_model = pe.shape
    seq_len = x.shape[1]
    assert seq_len <= max_len, "sequence length exceeds positional table length"

    copy_bytes = seq_len * d_model * pe.dtype.itemsize
    if not force_pallas:
        if seq_len == max_len:
            return pe                              # whole table: no copy at all
        if copy_bytes < min_pallas_bytes:
            # Small copies: plain slice — fuses into the downstream add and
            # avoids pallas_call launch / per-step overhead entirely.
            return pe[:, :seq_len, :]

    # Pallas HBM->HBM DMA path for large prefixes (or when forced).
    table = pe.reshape(max_len, d_model)
    table, n_rows = _dense_view(table, seq_len)
    out = _copy_rows_pallas(table, n_rows)
    return out.reshape(1, seq_len, d_model)


if __name__ == "__main__":
    key = jax.random.PRNGKey(0)
    k_pe, k_x, k_pe2 = jax.random.split(key, 3)

    # Small shapes consistent with the module: batch=2, seq=8, hidden(d_model)=32.
    B, S, D = 2, 8, 32
    max_len = 16

    # Learned parameter, mirroring torch.nn.init.normal_(self.pe, std=0.02).
    pe = 0.02 * jax.random.normal(k_pe, (1, max_len, D), dtype=jnp.float32)
    # x is only consumed for its sequence length (x.size(1)).
    x = jax.random.normal(k_x, (B, S, D), dtype=jnp.float32)

    # Exercise the Pallas DMA kernel explicitly.
    out = jax.block_until_ready(learned_positional_embedding2(pe, x, force_pallas=True))
    ref = pe[:, :S, :]
    assert out.shape == (1, S, D)
    assert jnp.array_equal(out, ref), "Pallas path mismatch vs reference"

    # Default dispatch: small copy takes the fused jnp-slice fast path.
    out_fast = jax.block_until_ready(learned_positional_embedding2(pe, x))
    assert jnp.array_equal(out_fast, ref), "fast path mismatch vs reference"

    # A modestly larger case that exercises the multi-chunk DMA path.
    max_len2, S2, D2 = 1024, 768, 768
    pe2 = 0.02 * jax.random.normal(k_pe2, (1, max_len2, D2), dtype=jnp.float32)
    x2 = jnp.zeros((1, S2, 1), dtype=jnp.float32)
    out2 = jax.block_until_ready(
        learned_positional_embedding2(pe2, x2, force_pallas=True))
    assert jnp.array_equal(out2, pe2[:, :S2, :]), "chunked DMA path mismatch"

    # TODO(synk): training-mode parameter gradients are handled by JAX autodiff
    # outside the kernel; nothing stochastic (no dropout) exists in this module.
    print("KERNEL_OK")
</pallas_src>

<mosaic_0001>
module attributes {stable_mosaic.version = 11 : i64} {
  func.func @kernel(%arg0: memref<2x256xf32, #tpu.memory_space<any>>, %arg1: memref<1x256xf32, #tpu.memory_space<any>>, %arg2: memref<1x!tpu.dma_semaphore, #tpu.memory_space<semaphore_mem>>) attributes {dimension_semantics = [], scalar_prefetch = 0 : i64, scratch_operands = 1 : i64, tpu.core_type = #tpu.core_type<tc>} {
    %c0_i32 = arith.constant 0 : i32
    %c0_i32_0 = arith.constant 0 : i32
    %c0_i32_1 = arith.constant 0 : i32
    %0 = tpu.memref_slice %arg0[%c0_i32_0, %c0_i32_1] : memref<2x256xf32, #tpu.memory_space<any>> -> memref<1x256xf32, #tpu.memory_space<any>>
    %c0_i32_2 = arith.constant 0 : i32
    %c0_i32_3 = arith.constant 0 : i32
    %1 = tpu.memref_slice %arg1[%c0_i32_2, %c0_i32_3] : memref<1x256xf32, #tpu.memory_space<any>> -> memref<1x256xf32, #tpu.memory_space<any>>
    %2 = tpu.memref_slice %arg2[%c0_i32] : memref<1x!tpu.dma_semaphore, #tpu.memory_space<semaphore_mem>> -> memref<1x!tpu.dma_semaphore, #tpu.memory_space<semaphore_mem>>
    %3 = tpu.memref_squeeze %2 : memref<1x!tpu.dma_semaphore, #tpu.memory_space<semaphore_mem>> -> memref<!tpu.dma_semaphore, #tpu.memory_space<semaphore_mem>>
    tpu.enqueue_dma source(%0 : memref<1x256xf32, #tpu.memory_space<any>>) target(%1 : memref<1x256xf32, #tpu.memory_space<any>>) target_semaphore(%3 : memref<!tpu.dma_semaphore, #tpu.memory_space<semaphore_mem>>)
    %c0_i32_4 = arith.constant 0 : i32
    %c0_i32_5 = arith.constant 0 : i32
    %c0_i32_6 = arith.constant 0 : i32
    %4 = tpu.memref_slice %arg0[%c0_i32_5, %c0_i32_6] : memref<2x256xf32, #tpu.memory_space<any>> -> memref<1x256xf32, #tpu.memory_space<any>>
    %c0_i32_7 = arith.constant 0 : i32
    %c0_i32_8 = arith.constant 0 : i32
    %5 = tpu.memref_slice %arg1[%c0_i32_7, %c0_i32_8] : memref<1x256xf32, #tpu.memory_space<any>> -> memref<1x256xf32, #tpu.memory_space<any>>
    %6 = tpu.memref_slice %arg2[%c0_i32_4] : memref<1x!tpu.dma_semaphore, #tpu.memory_space<semaphore_mem>> -> memref<1x!tpu.dma_semaphore, #tpu.memory_space<semaphore_mem>>
    %7 = tpu.memref_squeeze %6 : memref<1x!tpu.dma_semaphore, #tpu.memory_space<semaphore_mem>> -> memref<!tpu.dma_semaphore, #tpu.memory_space<semaphore_mem>>
    tpu.wait_dma2 semaphore(%7 : memref<!tpu.dma_semaphore, #tpu.memory_space<semaphore_mem>>) src(%4 : memref<1x256xf32, #tpu.memory_space<any>>) dst(%5 : memref<1x256xf32, #tpu.memory_space<any>>)
    return
  }
}

</mosaic_0001>

<bundles_post_ra>
// kernel: tpu_custom_call.1
= control target key start
LH: loop header
LB: loop body
LE: loop exit
PB: predicated region body
PF: predicated region fallthrough
CT: control target
= control target key end

     0   :  { %s37_s6 = smov 32   ;;  %s38_s7 = smov 16   ;;  %s59_s0 = inlined_call_operand.hbm [shape: f32[2,256], index: 0, kind: input, shape index: {}]   ;;  %s60_s1 = inlined_call_operand.hbm [shape: f32[1,256], index: 1, kind: output, shape index: {}]  }
   0x1   :  { %12 = sst [smem:[#allocation4]] %s37_s6  ;;  %s39_s8 = smov 1  }
   0x2   :  { %14 = sst [smem:[#allocation4 + $0x1]] %s38_s7  ;;  %s40_s9 = smov [#allocation2]  }
   0x3   :  { %16 = sst [smem:[#allocation4 + $0x2]] %s39_s8  ;;  %s41_s10 = smov 131072  }
   0x4   :  { %s42_s11 = smov 0  }
   0x5   :  { %18 = dma.general %s59_s0, 32, %s60_s1, %s40_s9, %s41_s10, [#allocation4], %s42_s11, 0  }
   0x6   :  { %35 = dma.done.wait [#allocation2], 32 }
   0x7   :  { %36 = vsyncadd [#allocation2], 4294967264 }
   0x8   :  { %22 = vsyncmov [#allocation2] }
   0xb   :  { %s23_s16 = vpop.sfrf %22 }
   0xc   :  { %p28_p0 = scmp.ne.s32.totalorder %s23_s16, 0 }
   0xe   :  { %27 = shalt.err (%p28_p0)  }

</bundles_post_ra>
